<compile_context>
chip_gen: v6e
topology: v6e:2x2x1
jax: 0.10.0
libtpu: 0.0.40
codegen_flags: <defaults>
</compile_context>

<pallas_src>
import functools

import jax
import jax.numpy as jnp
from jax import lax
from jax.experimental import pallas as pl
from jax.experimental.pallas import tpu as pltpu

EPS = 1e-5  # nn.InstanceNorm2d default eps


@functools.lru_cache(maxsize=None)
def _roll_matches_jnp() -> bool:
    """Probe the compiled pltpu.roll convention once (lazy + cached).

    We need out[k] == in[(k + off) % n].  pltpu.roll is documented/tested to
    match jnp.roll (out[i] = in[(i - shift) % n]); verify cheaply on the actual
    toolchain.  Runs lazily (not at import) and eagerly even under an outer
    jit trace via ensure_compile_time_eval.
    """
    def kern(x_ref, o_ref):
        o_ref[...] = pltpu.roll(x_ref[...], 1, axis=1)

    try:
        with jax.ensure_compile_time_eval():
            x = jnp.arange(8 * 128, dtype=jnp.float32).reshape(8, 128)
            got = pl.pallas_call(
                kern, out_shape=jax.ShapeDtypeStruct((8, 128), jnp.float32))(x)
            same = bool(jnp.array_equal(got, jnp.roll(x, 1, axis=1)))
        return same
    except Exception:
        return True  # documented jnp.roll convention


def _fwd_shift(off: int, n: int, roll_is_jnp: bool) -> int:
    """pltpu.roll shift realizing out[k] = in[(k + off) % n]."""
    return (n - off) % n if roll_is_jnp else off % n


def _pick_vmem_limit() -> int:
    # v5e / v6e have 128 MiB physical VMEM -> allow a 64 MiB scoped window so
    # large per-sample planes stay resident; v7x has only 64 MiB -> stay at 32.
    try:
        cap = pltpu.get_tpu_info().vmem_capacity_bytes
        return int(min(64 * 1024 * 1024, cap // 2))
    except Exception:
        return 32 * 1024 * 1024


# ----------------------------------------------------------------------------
# Fused kernel: one grid step == one sample.
# Spatial planes are row-flattened with per-row pitch Wp = W + 2 (1-pixel
# halo); columns >= W of each row and the padded tail are junk lanes that are
# masked out of the InstanceNorm statistics and cropped on the host.
# ----------------------------------------------------------------------------
def _upconv_fused_kernel(x_ref, w1_ref, w2_ref, b2_ref, mask_ref, o_ref,
                         *, H, W, Wp, Cout, roll_is_jnp):
    Lx = x_ref.shape[-1]
    n_valid = 4.0 * H * W      # pixels of the (2H, 2W) upsampled activation

    def shifted(a, off):
        return a if off == 0 else pltpu.roll(
            a, _fwd_shift(off, Lx, roll_is_jnp), axis=1)

    # --- stage 1: ConvTranspose2d(4, stride=2, padding=1) as ONE GEMM --------
    # The 9 distinct tap-shifted copies of the halo-padded plane (8 XLU rolls)
    # are stacked along K; the (4*Cout, 9*Cin_p) weight selects the 4 taps each
    # output parity needs, so one MXU pass covers all 4 parities.
    xpl = x_ref[...].astype(jnp.float32)                         # (Cin_p, Lx)
    ops1 = jnp.concatenate(
        [shifted(xpl, a * Wp + b) for a in range(3) for b in range(3)],
        axis=0).astype(jnp.bfloat16)                             # (9*Cin_p, Lx)
    # bf16 x bf16 -> f32 accumulate.  The deconv bias is never added: it is
    # constant per channel and cancels under InstanceNorm(affine=False).
    y = jnp.dot(w1_ref[...], ops1,
                preferred_element_type=jnp.float32)              # (4*Cout, Lx)

    # --- InstanceNorm2d(affine=False) statistics (one pass, masked) ----------
    mask = mask_ref[...]                                         # (1, Lx)
    ym = y * mask
    s_r = jnp.sum(ym, axis=1, keepdims=True)                     # (4*Cout, 1)
    q_r = jnp.sum(ym * ym, axis=1, keepdims=True)
    s = (s_r[0:Cout] + s_r[Cout:2 * Cout]
         + s_r[2 * Cout:3 * Cout] + s_r[3 * Cout:4 * Cout])      # (Cout, 1)
    q = (q_r[0:Cout] + q_r[Cout:2 * Cout]
         + q_r[2 * Cout:3 * Cout] + q_r[3 * Cout:4 * Cout])
    mean = s * (1.0 / n_valid)
    # Clamp the one-pass variance: E[y^2] - E[y]^2 can go slightly negative in
    # f32 and rsqrt would then return NaN.
    var = jnp.maximum(q * (1.0 / n_valid) - mean * mean, 0.0)
    inv = lax.rsqrt(var + EPS)
    mean4 = jnp.concatenate([mean, mean, mean, mean], axis=0)    # (4*Cout, 1)
    inv4 = jnp.concatenate([inv, inv, inv, inv], axis=0)

    # --- normalize + ReLU fused straight into the stage-2 operand build ------
    yn = jnp.maximum((y - mean4) * inv4, 0.0)                    # (4*Cout, Lx)

    # --- stage 2: 3x3 VALID conv + bias + ReLU as ONE GEMM -------------------
    # 3 rolls of the full 4-parity stack give the 4 lane offsets every output
    # parity draws its 9 taps from; K = 16*Cout, M = 4*Cout, one MXU pass.
    ops2 = jnp.concatenate(
        [shifted(yn, r * Wp + c) for r in range(2) for c in range(2)],
        axis=0).astype(jnp.bfloat16)                             # (16*Cout, Lx)
    z = jnp.dot(w2_ref[...], ops2,
                preferred_element_type=jnp.float32)              # (4*Cout, Lx)
    o_ref[...] = jnp.maximum(z + b2_ref[...], 0.0).astype(o_ref.dtype)


def upconv_block_forward(x, w_deconv, b_deconv, w_conv, b_conv):
    """x: (N, Cin, H, W) f32 -> (N, Cout, 2H-2, 2W-2) f32."""
    del b_deconv  # cancels exactly under InstanceNorm2d(affine=False)
    N, Cin, H, W = x.shape
    Cout = w_deconv.shape[1]
    Hp, Wp = H + 2, W + 2
    Lx = 128 * pl.cdiv(Hp * Wp, 128)        # flattened plane width (lane axis)
    Cin_p = 8 * pl.cdiv(Cin, 8)             # sublane-aligned channel pad
    roll_is_jnp = _roll_matches_jnp()

    # Single halo-padded, row-flattened bf16 input plane per (sample, channel).
    # No host-side tap expansion: stage-1 taps are lane rotations in-kernel.
    xp = jnp.pad(x, ((0, 0), (0, 0), (1, 1), (1, 1)))
    xplane = jnp.pad(xp.reshape(N, Cin, Hp * Wp),
                     ((0, 0), (0, Cin_p - Cin), (0, Lx - Hp * Wp)))
    xplane = xplane.astype(jnp.bfloat16)

    # Stage-1 weight (4*Cout, 9*Cin_p): row = parity(p,q)*Cout + co,
    # K slot = (a*3 + b)*Cin_p + ci with effective tap offset (a, b) = (p+di,
    # q+dj) and deconv kernel tap (kh, kw) = (3-p-2*di, 3-q-2*dj).
    w1 = jnp.zeros((4, Cout, 9, Cin_p), jnp.float32)
    for p in range(2):
        for q in range(2):
            for di in range(2):
                for dj in range(2):
                    w1 = w1.at[2 * p + q, :, (p + di) * 3 + (q + dj), :Cin].set(
                        w_deconv[:, :, 3 - p - 2 * di, 3 - q - 2 * dj].T)
    w1 = w1.reshape(4 * Cout, 9 * Cin_p).astype(jnp.bfloat16)

    # Stage-2 weight (4*Cout, 16*Cout): row = out-parity(zp,zq)*Cout + co,
    # K slot = offset-block(roff,coff)*4*Cout + src-parity(sp,sq)*Cout + ci.
    w2 = jnp.zeros((4, Cout, 4, 4, Cout), jnp.float32)
    for zp in range(2):
        for zq in range(2):
            for dr in range(3):
                for dc in range(3):
                    sp, roff = (zp + dr) % 2, (zp + dr) // 2
                    sq, coff = (zq + dc) % 2, (zq + dc) // 2
                    w2 = w2.at[2 * zp + zq, :, 2 * roff + coff,
                               2 * sp + sq, :].set(w_conv[:, :, dr, dc])
    w2 = w2.reshape(4 * Cout, 16 * Cout).astype(jnp.bfloat16)

    b2 = jnp.tile(b_conv.reshape(Cout, 1), (4, 1)).astype(jnp.float32)

    # InstanceNorm validity mask (halo columns + padded tail excluded).
    cols = jnp.arange(Lx, dtype=jnp.int32)
    mask = (((cols % Wp) < W) & (cols < H * Wp)).astype(jnp.float32)
    mask = mask.reshape(1, Lx)

    kern = functools.partial(_upconv_fused_kernel, H=H, W=W, Wp=Wp, Cout=Cout,
                             roll_is_jnp=roll_is_jnp)
    z = pl.pallas_call(
        kern,
        out_shape=jax.ShapeDtypeStruct((N, 4 * Cout, Lx), jnp.bfloat16),
        grid=(N,),
        in_specs=[
            pl.BlockSpec((None, Cin_p, Lx), lambda n: (n, 0, 0)),
            pl.BlockSpec((4 * Cout, 9 * Cin_p), lambda n: (0, 0)),
            pl.BlockSpec((4 * Cout, 16 * Cout), lambda n: (0, 0)),
            pl.BlockSpec((4 * Cout, 1), lambda n: (0, 0)),
            pl.BlockSpec((1, Lx), lambda n: (0, 0)),
        ],
        out_specs=pl.BlockSpec((None, 4 * Cout, Lx), lambda n: (n, 0, 0)),
        compiler_params=pltpu.CompilerParams(
            dimension_semantics=("parallel",),        # megacore over samples
            vmem_limit_bytes=_pick_vmem_limit()),
    )(xplane, w1, w2, b2, mask)
    # TODO(synk): for large H*W*Cout (esp. v7x's 64 MiB VMEM) add a grid axis
    # over Lx tiles with a two-pass InstanceNorm reduction so the working set
    # scales with the tile and batch=1 still gets >1-way core parallelism.

    # Re-interleave the 4 output parities and crop the halo-pitch junk columns
    # (bf16 kernel output halves this epilogue's HBM read).
    # TODO(synk): fold the parity interleave into the kernel's stores (bf16
    # pair packing for the column parity) to drop this extra XLA pass entirely.
    Lz = (H - 1) * Wp
    z = z[:, :, :Lz].astype(jnp.float32)
    z = z.reshape(N, 2, 2, Cout, H - 1, Wp)[..., :W - 1]
    z = z.transpose(0, 3, 4, 1, 5, 2).reshape(N, Cout, 2 * H - 2, 2 * W - 2)
    return z


def reference_forward(x, w_deconv, b_deconv, w_conv, b_conv):
    """Pure-JAX reference matching the PyTorch module semantics."""
    wc = jnp.flip(w_deconv, axis=(2, 3)).transpose(1, 0, 2, 3)     # OIHW
    y = lax.conv_general_dilated(
        x, wc, window_strides=(1, 1), padding=[(2, 2), (2, 2)],
        lhs_dilation=(2, 2), dimension_numbers=('NCHW', 'OIHW', 'NCHW'),
        precision=lax.Precision.HIGHEST)
    y = y + b_deconv[None, :, None, None]
    mean = y.mean(axis=(2, 3), keepdims=True)
    var = ((y - mean) ** 2).mean(axis=(2, 3), keepdims=True)
    y = jnp.maximum((y - mean) / jnp.sqrt(var + EPS), 0.0)
    z = lax.conv_general_dilated(
        y, w_conv, window_strides=(1, 1), padding='VALID',
        dimension_numbers=('NCHW', 'OIHW', 'NCHW'),
        precision=lax.Precision.HIGHEST)
    return jnp.maximum(z + b_conv[None, :, None, None], 0.0)


if __name__ == "__main__":
    key = jax.random.PRNGKey(0)
    k1, k2, k3, k4, k5 = jax.random.split(key, 5)
    N, Cin, Cout, H, W = 2, 4, 8, 16, 16

    x = jax.random.normal(k1, (N, Cin, H, W), jnp.float32)
    # ConvTranspose2d weight layout: (in_channels, out_channels, 4, 4)
    w_deconv = jax.random.normal(k2, (Cin, Cout, 4, 4), jnp.float32) * 0.1
    b_deconv = jax.random.normal(k3, (Cout,), jnp.float32) * 0.1
    # Conv2d weight layout: (out_channels, in_channels, 3, 3)
    w_conv = jax.random.normal(k4, (Cout, Cout, 3, 3), jnp.float32) * 0.1
    b_conv = jax.random.normal(k5, (Cout,), jnp.float32) * 0.1

    out = jax.jit(upconv_block_forward)(x, w_deconv, b_deconv, w_conv, b_conv)
    out = jax.block_until_ready(out)

    ref = reference_forward(x, w_deconv, b_deconv, w_conv, b_conv)
    assert out.shape == (N, Cout, 2 * H - 2, 2 * W - 2), out.shape
    # bf16 MXU operands / bf16 kernel output vs. an f32 HIGHEST-precision
    # reference -> bf16-class tolerance (intentional accuracy trade-off).
    assert jnp.allclose(out, ref, atol=3e-2, rtol=3e-2), \
        float(jnp.max(jnp.abs(out - ref)))
    print("KERNEL_OK")
</pallas_src>

<mosaic_0001>
module attributes {stable_mosaic.version = 11 : i64} {
  func.func @_upconv_fused_kernel(%arg0: i32, %arg1: memref<1x8x384xbf16, #tpu.memory_space<vmem>>, %arg2: memref<32x72xbf16, #tpu.memory_space<vmem>>, %arg3: memref<32x128xbf16, #tpu.memory_space<vmem>>, %arg4: memref<32x1xf32, #tpu.memory_space<vmem>>, %arg5: memref<1x384xf32, #tpu.memory_space<vmem>>, %arg6: memref<1x32x384xbf16, #tpu.memory_space<vmem>>) attributes {dimension_semantics = [#tpu.dimension_semantics<parallel>], iteration_bounds = array<i64: 2>, scalar_prefetch = 0 : i64, scratch_operands = 0 : i64, tpu.core_type = #tpu.core_type<tc>, window_params = [{transform_indices = @transform_0, window_bounds = array<i64: 1, 8, 384>}, {pipeline_mode = #tpu.pipeline_mode<synchronous>, transform_indices = @transform_1, window_bounds = array<i64: 32, 72>}, {pipeline_mode = #tpu.pipeline_mode<synchronous>, transform_indices = @transform_2, window_bounds = array<i64: 32, 128>}, {pipeline_mode = #tpu.pipeline_mode<synchronous>, transform_indices = @transform_3, window_bounds = array<i64: 32, 1>}, {pipeline_mode = #tpu.pipeline_mode<synchronous>, transform_indices = @transform_4, window_bounds = array<i64: 1, 384>}, {transform_indices = @transform_5, window_bounds = array<i64: 1, 32, 384>}]} {
    %c0 = arith.constant 0 : index
    %c0_0 = arith.constant 0 : index
    %c0_1 = arith.constant 0 : index
    %0 = vector.load %arg1[%c0, %c0_0, %c0_1] : memref<1x8x384xbf16, #tpu.memory_space<vmem>>, vector<1x8x384xbf16>
    %1 = vector.shape_cast %0 : vector<1x8x384xbf16> to vector<8x384xbf16>
    %2 = arith.extf %1 : vector<8x384xbf16> to vector<8x384xf32>
    %c383_i32 = arith.constant 383 : i32
    %3 = tpu.dynamic_rotate %2 by %c383_i32 dim 1 : vector<8x384xf32>, i32 -> vector<8x384xf32>
    %c382_i32 = arith.constant 382 : i32
    %4 = tpu.dynamic_rotate %2 by %c382_i32 dim 1 : vector<8x384xf32>, i32 -> vector<8x384xf32>
    %c366_i32 = arith.constant 366 : i32
    %5 = tpu.dynamic_rotate %2 by %c366_i32 dim 1 : vector<8x384xf32>, i32 -> vector<8x384xf32>
    %c365_i32 = arith.constant 365 : i32
    %6 = tpu.dynamic_rotate %2 by %c365_i32 dim 1 : vector<8x384xf32>, i32 -> vector<8x384xf32>
    %c364_i32 = arith.constant 364 : i32
    %7 = tpu.dynamic_rotate %2 by %c364_i32 dim 1 : vector<8x384xf32>, i32 -> vector<8x384xf32>
    %c348_i32 = arith.constant 348 : i32
    %8 = tpu.dynamic_rotate %2 by %c348_i32 dim 1 : vector<8x384xf32>, i32 -> vector<8x384xf32>
    %c347_i32 = arith.constant 347 : i32
    %9 = tpu.dynamic_rotate %2 by %c347_i32 dim 1 : vector<8x384xf32>, i32 -> vector<8x384xf32>
    %c346_i32 = arith.constant 346 : i32
    %10 = tpu.dynamic_rotate %2 by %c346_i32 dim 1 : vector<8x384xf32>, i32 -> vector<8x384xf32>
    %11 = tpu.concatenate %2, %3, %4, %5, %6, %7, %8, %9, %10 in 0 : vector<8x384xf32>, vector<8x384xf32>, vector<8x384xf32>, vector<8x384xf32>, vector<8x384xf32>, vector<8x384xf32>, vector<8x384xf32>, vector<8x384xf32>, vector<8x384xf32> -> vector<72x384xf32>
    %12 = arith.truncf %11 : vector<72x384xf32> to vector<72x384xbf16>
    %c0_2 = arith.constant 0 : index
    %c0_3 = arith.constant 0 : index
    %13 = vector.load %arg2[%c0_2, %c0_3] : memref<32x72xbf16, #tpu.memory_space<vmem>>, vector<32x72xbf16>
    %cst = arith.constant dense<0.000000e+00> : vector<32x384xf32>
    %14 = tpu.matmul %13, %12, %cst {dimension_numbers = #tpu.dot_dimension_numbers<[1], [0], [0], [1], [0, 0, 1, 1], [], []>} : vector<32x72xbf16>, vector<72x384xbf16>, vector<32x384xf32> -> vector<32x384xf32>
    %c0_4 = arith.constant 0 : index
    %c0_5 = arith.constant 0 : index
    %15 = vector.load %arg5[%c0_4, %c0_5] : memref<1x384xf32, #tpu.memory_space<vmem>>, vector<1x384xf32>
    %16 = vector.broadcast %15 : vector<1x384xf32> to vector<32x384xf32>
    %17 = arith.mulf %14, %16 : vector<32x384xf32>
    %cst_6 = arith.constant dense<0.000000e+00> : vector<32xf32>
    %18 = vector.multi_reduction <add>, %17, %cst_6 [1] : vector<32x384xf32> to vector<32xf32>
    %19 = vector.shape_cast %18 : vector<32xf32> to vector<32x1xf32>
    %20 = arith.mulf %17, %17 : vector<32x384xf32>
    %cst_7 = arith.constant dense<0.000000e+00> : vector<32xf32>
    %21 = vector.multi_reduction <add>, %20, %cst_7 [1] : vector<32x384xf32> to vector<32xf32>
    %22 = vector.shape_cast %21 : vector<32xf32> to vector<32x1xf32>
    %23 = vector.extract_strided_slice %19 {offsets = [0, 0], sizes = [8, 1], strides = [1, 1]} : vector<32x1xf32> to vector<8x1xf32>
    %24 = vector.extract_strided_slice %19 {offsets = [8, 0], sizes = [8, 1], strides = [1, 1]} : vector<32x1xf32> to vector<8x1xf32>
    %25 = arith.addf %23, %24 : vector<8x1xf32>
    %26 = vector.extract_strided_slice %19 {offsets = [16, 0], sizes = [8, 1], strides = [1, 1]} : vector<32x1xf32> to vector<8x1xf32>
    %27 = arith.addf %25, %26 : vector<8x1xf32>
    %28 = vector.extract_strided_slice %19 {offsets = [24, 0], sizes = [8, 1], strides = [1, 1]} : vector<32x1xf32> to vector<8x1xf32>
    %29 = arith.addf %27, %28 : vector<8x1xf32>
    %30 = vector.extract_strided_slice %22 {offsets = [0, 0], sizes = [8, 1], strides = [1, 1]} : vector<32x1xf32> to vector<8x1xf32>
    %31 = vector.extract_strided_slice %22 {offsets = [8, 0], sizes = [8, 1], strides = [1, 1]} : vector<32x1xf32> to vector<8x1xf32>
    %32 = arith.addf %30, %31 : vector<8x1xf32>
    %33 = vector.extract_strided_slice %22 {offsets = [16, 0], sizes = [8, 1], strides = [1, 1]} : vector<32x1xf32> to vector<8x1xf32>
    %34 = arith.addf %32, %33 : vector<8x1xf32>
    %35 = vector.extract_strided_slice %22 {offsets = [24, 0], sizes = [8, 1], strides = [1, 1]} : vector<32x1xf32> to vector<8x1xf32>
    %36 = arith.addf %34, %35 : vector<8x1xf32>
    %cst_8 = arith.constant 9.765625E-4 : f32
    %37 = vector.broadcast %cst_8 : f32 to vector<8x1xf32>
    %38 = arith.mulf %29, %37 : vector<8x1xf32>
    %cst_9 = arith.constant 9.765625E-4 : f32
    %39 = vector.broadcast %cst_9 : f32 to vector<8x1xf32>
    %40 = arith.mulf %36, %39 : vector<8x1xf32>
    %41 = arith.mulf %38, %38 : vector<8x1xf32>
    %42 = arith.subf %40, %41 : vector<8x1xf32>
    %cst_10 = arith.constant 0.000000e+00 : f32
    %43 = vector.broadcast %cst_10 : f32 to vector<8x1xf32>
    %44 = arith.maximumf %42, %43 : vector<8x1xf32>
    %cst_11 = arith.constant 9.99999974E-6 : f32
    %45 = vector.broadcast %cst_11 : f32 to vector<8x1xf32>
    %46 = arith.addf %44, %45 : vector<8x1xf32>
    %47 = math.rsqrt %46 : vector<8x1xf32>
    %48 = tpu.concatenate %38, %38, %38, %38 in 0 : vector<8x1xf32>, vector<8x1xf32>, vector<8x1xf32>, vector<8x1xf32> -> vector<32x1xf32>
    %49 = tpu.concatenate %47, %47, %47, %47 in 0 : vector<8x1xf32>, vector<8x1xf32>, vector<8x1xf32>, vector<8x1xf32> -> vector<32x1xf32>
    %50 = vector.broadcast %48 : vector<32x1xf32> to vector<32x384xf32>
    %51 = arith.subf %14, %50 : vector<32x384xf32>
    %52 = vector.broadcast %49 : vector<32x1xf32> to vector<32x384xf32>
    %53 = arith.mulf %51, %52 : vector<32x384xf32>
    %cst_12 = arith.constant 0.000000e+00 : f32
    %54 = vector.broadcast %cst_12 : f32 to vector<32x384xf32>
    %55 = arith.maximumf %53, %54 : vector<32x384xf32>
    %c383_i32_13 = arith.constant 383 : i32
    %56 = tpu.dynamic_rotate %55 by %c383_i32_13 dim 1 : vector<32x384xf32>, i32 -> vector<32x384xf32>
    %c366_i32_14 = arith.constant 366 : i32
    %57 = tpu.dynamic_rotate %55 by %c366_i32_14 dim 1 : vector<32x384xf32>, i32 -> vector<32x384xf32>
    %c365_i32_15 = arith.constant 365 : i32
    %58 = tpu.dynamic_rotate %55 by %c365_i32_15 dim 1 : vector<32x384xf32>, i32 -> vector<32x384xf32>
    %59 = tpu.concatenate %55, %56, %57, %58 in 0 : vector<32x384xf32>, vector<32x384xf32>, vector<32x384xf32>, vector<32x384xf32> -> vector<128x384xf32>
    %60 = arith.truncf %59 : vector<128x384xf32> to vector<128x384xbf16>
    %c0_16 = arith.constant 0 : index
    %c0_17 = arith.constant 0 : index
    %61 = vector.load %arg3[%c0_16, %c0_17] : memref<32x128xbf16, #tpu.memory_space<vmem>>, vector<32x128xbf16>
    %cst_18 = arith.constant dense<0.000000e+00> : vector<32x384xf32>
    %62 = tpu.matmul %61, %60, %cst_18 {dimension_numbers = #tpu.dot_dimension_numbers<[1], [0], [0], [1], [0, 0, 1, 1], [], []>} : vector<32x128xbf16>, vector<128x384xbf16>, vector<32x384xf32> -> vector<32x384xf32>
    %c0_19 = arith.constant 0 : index
    %c0_20 = arith.constant 0 : index
    %63 = vector.load %arg4[%c0_19, %c0_20] : memref<32x1xf32, #tpu.memory_space<vmem>>, vector<32x1xf32>
    %64 = vector.broadcast %63 : vector<32x1xf32> to vector<32x384xf32>
    %65 = arith.addf %62, %64 : vector<32x384xf32>
    %cst_21 = arith.constant 0.000000e+00 : f32
    %66 = vector.broadcast %cst_21 : f32 to vector<32x384xf32>
    %67 = arith.maximumf %65, %66 : vector<32x384xf32>
    %68 = arith.truncf %67 : vector<32x384xf32> to vector<32x384xbf16>
    %c0_22 = arith.constant 0 : index
    %c0_23 = arith.constant 0 : index
    %c0_24 = arith.constant 0 : index
    %69 = vector.load %arg6[%c0_22, %c0_23, %c0_24] : memref<1x32x384xbf16, #tpu.memory_space<vmem>>, vector<1x32x384xbf16>
    %70 = vector.shape_cast %69 : vector<1x32x384xbf16> to vector<32x384xbf16>
    %71 = vector.shape_cast %68 : vector<32x384xbf16> to vector<1x32x384xbf16>
    tpu.vector_store %arg6[%c0_22, %c0_23, %c0_24], %71 {strides = array<i32>} : memref<1x32x384xbf16, #tpu.memory_space<vmem>>, vector<1x32x384xbf16>,
    return
  }
  func.func @transform_0(%arg0: i32) -> (i32, i32, i32) {
    %c0_i32 = arith.constant 0 : i32
    %c0_i32_0 = arith.constant 0 : i32
    %c0_i32_1 = arith.constant 0 : i32
    return %arg0, %c0_i32, %c0_i32_0 : i32, i32, i32
  }
  func.func @transform_1(%arg0: i32) -> (i32, i32) {
    %c0_i32 = arith.constant 0 : i32
    %c0_i32_0 = arith.constant 0 : i32
    %c0_i32_1 = arith.constant 0 : i32
    return %c0_i32, %c0_i32_0 : i32, i32
  }
  func.func @transform_2(%arg0: i32) -> (i32, i32) {
    %c0_i32 = arith.constant 0 : i32
    %c0_i32_0 = arith.constant 0 : i32
    %c0_i32_1 = arith.constant 0 : i32
    return %c0_i32, %c0_i32_0 : i32, i32
  }
  func.func @transform_3(%arg0: i32) -> (i32, i32) {
    %c0_i32 = arith.constant 0 : i32
    %c0_i32_0 = arith.constant 0 : i32
    %c0_i32_1 = arith.constant 0 : i32
    return %c0_i32, %c0_i32_0 : i32, i32
  }
  func.func @transform_4(%arg0: i32) -> (i32, i32) {
    %c0_i32 = arith.constant 0 : i32
    %c0_i32_0 = arith.constant 0 : i32
    %c0_i32_1 = arith.constant 0 : i32
    return %c0_i32, %c0_i32_0 : i32, i32
  }
  func.func @transform_5(%arg0: i32) -> (i32, i32, i32) {
    %c0_i32 = arith.constant 0 : i32
    %c0_i32_0 = arith.constant 0 : i32
    %c0_i32_1 = arith.constant 0 : i32
    return %arg0, %c0_i32, %c0_i32_0 : i32, i32, i32
  }
}

</mosaic_0001>

<bundles_post_ra>
// kernel: upconv_block_forward.1
= control target key start
LH: loop header
LB: loop body
LE: loop exit
PB: predicated region body
PF: predicated region fallthrough
CT: control target
= control target key end

     0   :  { %s1272_s18 = smov 0   ;;  %s1571_s0 = inlined_call_operand.vmem [shape: bf16[2,8,384], index: 0, kind: input, shape index: {}]   ;;  %s1572_s1 = inlined_call_operand.vmem [shape: bf16[32,72], index: 1, kind: input, shape index: {}]   ;;  %s1573_s2 = inlined_call_operand.vmem [shape: bf16[32,128], index: 2, kind: input, shape index: {}]   ;;  %s1574_s3 = inlined_call_operand.vmem [shape: f32[32,1], index: 3, kind: input, shape index: {}]   ;;  %s1575_s4 = inlined_call_operand.vmem [shape: f32[1,384], index: 4, kind: input, shape index: {}]   ;;  %s1576_s5 = inlined_call_operand.vmem [shape: bf16[2,32,384], index: 5, kind: output, shape index: {}]  }
   0x1 LB: > { %s982_s19 = sadd.s32 4294967295, %s1231_s18   ;;  %p986_p0 = scmp.ge.s32.totalorder %s1231_s18, 1  ;;  %s1231_s18 = sphi %s1272_s18, %s15_s18  }
   0x2   : > { %p187_p1 = scmp.lt.s32.totalorder %s1231_s18, 3 }
   0x4   : > { %p188_p2 = pnand %p986_p0, %p187_p1 }
   0x5   : > { %p215_p3 = scmp.lt.s32.totalorder (!%p188_p2), %s982_s19, 1  ;;  %s1233_s24 = smov (!%p188_p2), 92  }
   0x6   : > { %191 = sbr.rel (%p188_p2) target bundleno = 1074 (0x432), region = 40  ;;  %s1234_s25 = smov (!%p188_p2), 90  }
   0x7   : > { %s1235_s26 = smov (!%p188_p2), 91   ;;  %s1236_s27 = smov (!%p188_p2), 108  }
   0x8   : > { %s1237_s28 = smov (!%p188_p2), 109   ;;  %s1238_s29 = smov (!%p188_p2), 110  }
   0x9   : > { %s1239_s30 = smov (!%p188_p2), 126   ;;  %s1241_s8 = smov (!%p188_p2), 127  }
   0xb   : > { %s1578_s19 = smov (!%p215_p3, %s982_s19), 1  ;;  %v1307_v7 = vld [vmem:[%s1572_s1] sm:$0xff]   ;;  %vm342_vm0 = vcmask 588800   ;;  %v1240_v8 = vmov 0   ;;  %v237_v9 = vlaneseq  ;;  %vm349_vm4 = vcmask 1043456  }
   0xc   : > { %s1068_s20 = smul.u32 12, %s1578_s19  ;;  %391 = vmatprep.mubr.bf16.mxu0 %v1240_v8  ;;  %1127 = vset.pattern.permute.xlu1 %v1240_v8 }
   0xd   : > { %1043 = vmatprep.mubr.msk.bf16.mxu1 %vm342_vm0, %v1307_v7  ;;  %1128 = vset.pattern.permute.xlu0 %v1240_v8  ;;  %v1321_v10 = vand.u32 127, %v237_v9 }
   0xe   : > { %s219_s23 = scalar_lea.vmem %s1571_s0, %s1068_s20 }
   0xf   : > { %v226_v0 = vld [vmem:[%s219_s23] sm:$0xff]  ;;  %v227_v1 = vld [vmem:[%s219_s23 + $0x8] sm:$0xf]  ;;  %vm289_vm1 = vcmp.lt.s32.totalorder %v1321_v10, 92  ;;  %vm309_vm2 = vcmp.lt.s32.totalorder %v1321_v10, 90  ;;  %vm299_vm3 = vcmp.lt.s32.totalorder %v1321_v10, 91 }
  0x10   : > { %v1286_v2 = vunpack.c.h.bf16 %v226_v0  ;;  %v1288_v3 = vunpack.c.l.bf16 %v227_v1  ;;  %v1290_v4 = vunpack.c.l.bf16 %v226_v0  ;;  %vm279_vm5 = vcmp.lt.s32.totalorder %v1321_v10, 108 }
  0x11   : > { %vm269_vm6 = vcmp.lt.s32.totalorder %v1321_v10, 109  ;;  %vm259_vm7 = vcmp.lt.s32.totalorder %v1321_v10, 110  ;;  %vm249_vm8 = vcmp.lt.s32.totalorder %v1321_v10, 126  ;;  %vm239_vm9 = vcmp.lt.s32.totalorder %v1321_v10, 127  ;;  %v1222_v10 = vld [vmem:[%s1573_s2 + $0x8] sm:$0xff]  }
  0x12   : > { %v1092_v5 = vpack.i.bf16 %v1288_v3, %v1286_v2  ;;  %v1087_v6 = vpack.i.bf16 %v1286_v2, %v1290_v4 }
  0x14   : > { %1093 = vrot.lane.b32.xlu1 %v1092_v5, %s1233_s24  ;;  %1088 = vrot.lane.b32.xlu0 %v1087_v6, %s1234_s25 }
  0x18   : > { %1098 = vrot.lane.b32.xlu1 %v1092_v5, %s1235_s26  ;;  %307 = vrot.lane.b32.xlu0 %v1288_v3, %s1234_s25 }
  0x1c   : > { %293 = vrot.lane.b32.xlu1 %v1290_v4, %s1235_s26  ;;  %283 = vrot.lane.b32.xlu0 %v1290_v4, %s1233_s24 }
  0x20   : > { %1108 = vrot.lane.b32.xlu1 %v1092_v5, %s1236_s27  ;;  %1103 = vrot.lane.b32.xlu0 %v1092_v5, %s1237_s28 }
  0x24   : > { %273 = vrot.lane.b32.xlu1 %v1290_v4, %s1236_s27  ;;  %263 = vrot.lane.b32.xlu0 %v1290_v4, %s1237_s28  ;;  %s1069_s27 = smul.u32 48, %s1578_s19 }
  0x28   : > { %1118 = vrot.lane.b32.xlu1 %v1092_v5, %s1238_s29  ;;  %1113 = vrot.lane.b32.xlu0 %v1092_v5, %s1239_s30 }
  0x2c   : > { %253 = vrot.lane.b32.xlu1 %v1290_v4, %s1238_s29  ;;  %243 = vrot.lane.b32.xlu0 %v1290_v4, %s1239_s30  ;;  %s1558_s30 = scalar_lea.vmem %s1576_s5, %s1069_s27 }
  0x30   : > { %1123 = vrot.lane.b32.xlu0 %v1092_v5, %s1241_s8  ;;  %231 = vrot.lane.b32.xlu1 %v1290_v4, %s1241_s8 }
  0x86   : > { %v1094_v11 = vpop.permute.xlu1 %1093  ;;  %v1089_v12 = vpop.permute.xlu0 %1088 }
  0x87   : > { %v1096_v13 = vunpack.i.h.bf16 %v1094_v11  ;;  %v1095_v14 = vunpack.i.l.bf16 %v1094_v11  ;;  %v1091_v15 = vunpack.i.h.bf16 %v1089_v12  ;;  %v1090_v16 = vunpack.i.l.bf16 %v1089_v12 }
  0x89   : > { %v311_v17 = vsel %vm309_vm2, %v1090_v16, %v1091_v15  ;;  %v290_v21 = vsel %vm289_vm1, %v1095_v14, %v1096_v13 }
  0x8a   : > { %v1099_v18 = vpop.permute.xlu1 %1098  ;;  %v308_v19 = vpop.permute.xlu0 %307  ;;  %v325_v20 = vpack.c.bf16 %v311_v17, %v311_v17 }
  0x8b   : > { %v1101_v22 = vunpack.i.h.bf16 %v1099_v18  ;;  %v1100_v23 = vunpack.i.l.bf16 %v1099_v18  ;;  %v310_v24 = vsel %vm309_vm2, %v1091_v15, %v308_v19  ;;  %v312_v25 = vsel %vm309_vm2, %v308_v19, %v1090_v16 }
  0x8c   : > { %v326_v26 = vpack.c.bf16 %v310_v24, %v310_v24  ;;  %v327_v27 = vpack.c.bf16 %v312_v25, %v312_v25  ;;  %v351_v31 = vsel %vm349_vm4, %v325_v20, 0 }
  0x8d   : > { %v300_v28 = vsel %vm299_vm3, %v1100_v23, %v1101_v22 }
  0x8e   : > { %v294_v29 = vpop.permute.xlu1 %293  ;;  %v284_v30 = vpop.permute.xlu0 %283  ;;  %991 = vmatprep.subr.msk.bf16.mxu0 %vm349_vm4, %v326_v26  ;;  %1067 = vmatprep.subr.msk.bf16.mxu1 %vm349_vm4, %v327_v27  ;;  %v357_v32 = vsel %vm349_vm4, %v327_v27, 0  ;;  %v323_v33 = vpack.c.bf16 %v300_v28, %v290_v21  ;;  %v1220_v27 = vld [vmem:[%s1572_s1 + $0x8] sm:$0xff]  }
  0x8f   : > { %v301_v34 = vsel %vm299_vm3, %v294_v29, %v1100_v23  ;;  %v302_v35 = vsel %vm299_vm3, %v1101_v22, %v294_v29  ;;  %v291_v36 = vsel %vm289_vm1, %v284_v30, %v1095_v14  ;;  %v292_v37 = vsel %vm289_vm1, %v1096_v13, %v284_v30  ;;  %366 = vmatpush1.bf16.msra.mxu0 %v351_v31 }
  0x90   : > { %v322_v38 = vpack.c.bf16 %v301_v34, %v291_v36  ;;  %v324_v39 = vpack.c.bf16 %v302_v35, %v292_v37  ;;  %1034 = vmatpush3.bf16.msra.mxu1 %v357_v32  ;;  %367 = vmatprep.subr.bf16.mxu0 %v323_v33 }
  0x92   : > { %v1109_v40 = vpop.permute.xlu1 %1108  ;;  %v1104_v41 = vpop.permute.xlu0 %1103  ;;  %1035 = vmatprep.subr.bf16.mxu1 %v324_v39 }
  0x93   : > { %v1111_v42 = vunpack.i.h.bf16 %v1109_v40  ;;  %v1110_v43 = vunpack.i.l.bf16 %v1109_v40  ;;  %v1106_v44 = vunpack.i.h.bf16 %v1104_v41  ;;  %v1105_v45 = vunpack.i.l.bf16 %v1104_v41  ;;  %368 = vmatpush1.bf16.msra.mxu0 %v322_v38 }
  0x94   : > { %1036 = vmatpush3.bf16.msra.mxu1 %v324_v39 }
  0x95   : > { %v270_v46 = vsel %vm269_vm6, %v1105_v45, %v1106_v44  ;;  %v280_v47 = vsel %vm279_vm5, %v1110_v43, %v1111_v42 }
  0x96   : > { %v274_v48 = vpop.permute.xlu1 %273  ;;  %v264_v49 = vpop.permute.xlu0 %263  ;;  %v320_v50 = vpack.c.bf16 %v280_v47, %v270_v46 }
  0x97   : > { %v281_v51 = vsel %vm279_vm5, %v274_v48, %v1110_v43  ;;  %v282_v52 = vsel %vm279_vm5, %v1111_v42, %v274_v48  ;;  %v271_v53 = vsel %vm269_vm6, %v264_v49, %v1105_v45  ;;  %v272_v54 = vsel %vm269_vm6, %v1106_v44, %v264_v49 }
  0x98   : > { %v319_v55 = vpack.c.bf16 %v281_v51, %v271_v53  ;;  %v321_v56 = vpack.c.bf16 %v282_v52, %v272_v54  ;;  %369 = vmatprep.subr.bf16.mxu0 %v320_v50 }
  0x9a   : > { %v1119_v57 = vpop.permute.xlu1 %1118  ;;  %v1114_v58 = vpop.permute.xlu0 %1113  ;;  %370 = vmatpush1.bf16.msra.mxu0 %v319_v55  ;;  %1037 = vmatprep.subr.bf16.mxu1 %v321_v56 }
  0x9b   : > { %v1121_v59 = vunpack.i.h.bf16 %v1119_v57  ;;  %v1120_v60 = vunpack.i.l.bf16 %v1119_v57  ;;  %v1116_v61 = vunpack.i.h.bf16 %v1114_v58  ;;  %v1115_v62 = vunpack.i.l.bf16 %v1114_v58  ;;  %1038 = vmatpush3.bf16.msra.mxu1 %v321_v56 }
  0x9d   : > { %v250_v63 = vsel %vm249_vm8, %v1115_v62, %v1116_v61  ;;  %v260_v0 = vsel %vm259_vm7, %v1120_v60, %v1121_v59 }
  0x9e   : > { %v254_v1 = vpop.permute.xlu1 %253  ;;  %v244_v5 = vpop.permute.xlu0 %243  ;;  %v317_v6 = vpack.c.bf16 %v260_v0, %v250_v63 }
  0x9f   : > { %v261_v11 = vsel %vm259_vm7, %v254_v1, %v1120_v60  ;;  %v262_v12 = vsel %vm259_vm7, %v1121_v59, %v254_v1  ;;  %v251_v13 = vsel %vm249_vm8, %v244_v5, %v1115_v62  ;;  %v252_v14 = vsel %vm249_vm8, %v1116_v61, %v244_v5 }
  0xa0   : > { %v316_v15 = vpack.c.bf16 %v261_v11, %v251_v13  ;;  %v318_v16 = vpack.c.bf16 %v262_v12, %v252_v14  ;;  %371 = vmatprep.subr.bf16.mxu0 %v317_v6 }
  0xa2   : > { %v1124_v17 = vpop.permute.xlu0 %1123  ;;  %372 = vmatpush1.bf16.msra.mxu0 %v316_v15  ;;  %1039 = vmatprep.subr.bf16.mxu1 %v318_v16  ;;  %v232_v18 = vpop.permute.xlu1 %231 }
  0xa3   : > { %v1126_v19 = vunpack.i.h.bf16 %v1124_v17  ;;  %v1125_v20 = vunpack.i.l.bf16 %v1124_v17  ;;  %1040 = vmatpush3.bf16.msra.mxu1 %v318_v16 }
  0xa5   : > { %v241_v21 = vsel %vm239_vm9, %v232_v18, %v1125_v20  ;;  %v242_v22 = vsel %vm239_vm9, %v1126_v19, %v232_v18  ;;  %v240_v23 = vsel %vm239_vm9, %v1125_v20, %v1126_v19 }
  0xa6   : > { %v313_v24 = vpack.c.bf16 %v241_v21, %v1290_v4  ;;  %v315_v25 = vpack.c.bf16 %v242_v22, %v1288_v3  ;;  %v314_v26 = vpack.c.bf16 %v240_v23, %v1286_v2  ;;  %v464_v2 = vshrl.u32 %v237_v9, 7  ;;  %v461_v4 = vld [vmem:[%s1575_s4] sm:$0x7] }
  0xa8   : > { %373 = vmatprep.subr.bf16.mxu0 %v314_v26  ;;  %1041 = vmatprep.subr.bf16.mxu1 %v315_v25  ;;  %v465_v3 = vsub.s32 0, %v464_v2  ;;  %v469_v28 = vsub.s32 1, %v464_v2  ;;  %v473_v29 = vsub.s32 2, %v464_v2 }
  0xa9   : > { %374 = vmatpush1.bf16.msra.mxu0 %v313_v24  ;;  %1042 = vmatpush3.bf16.msra.mxu1 %v315_v25 }
  0xaa   : > { %v466_v30 = vrot.slane %v461_v4, %v465_v3  ;;  %v470_v31 = vrot.slane %v461_v4, %v469_v28  ;;  %v474_v33 = vrot.slane %v461_v4, %v473_v29 }
  0xac   : > { %992 = vmatmul.mubr.msk.bf16.vlgmr.msra.gmra.mxu0 %vm342_vm0, %v1307_v7  ;;  %1044 = vmatmul.mubr.msk.bf16.vlgmr.msra.gmra.mxu1 %vm342_vm0, %v1220_v27 }
  0xad   : > { %401 = vmatprep.mubr.bf16.mxu0 %v1240_v8 }
  0xb4   : > { %993 = vmatmul.mubr.msk.bf16.gmra.mxu0 %vm342_vm0, %v1220_v27 }
  0xb5   : > { %797 = vmatprep.mubr.bf16.mxu0 %v1240_v8 }
 0x16c   : > { %v1377_v7 = vpop.f32.mrf.mxu0  ;;  %v1379_v32 = vpop.f32.mrf.mxu1 }
 0x16d   : > { %v478_v34 = vmul.f32 %v466_v30, %v1377_v7  ;;  %v486_v61 = vmul.f32 %v1379_v32, %v474_v33 }
 0x16e   : > { %v1382_v35 = vpop.f32.mrf.mxu0  ;;  %v1384_v36 = vpop.f32.mrf.mxu1 }
 0x16f   : > { %v479_v9 = vmul.f32 %v470_v31, %v1382_v35  ;;  %v480_v37 = vmul.f32 %v474_v33, %v1384_v36  ;;  %v506_v43 = vmul.f32 %v478_v34, %v478_v34  ;;  %v514_v18 = vmul.f32 %v486_v61, %v486_v61 }
 0x170   : > { %v1388_v38 = vpop.f32.mrf.mxu0  ;;  %v1390_v39 = vpop.f32.mrf.mxu1 }
 0x171   : > { %v507_v40 = vmul.f32 %v479_v9, %v479_v9  ;;  %v481_v41 = vmul.f32 %v466_v30, %v1388_v38  ;;  %v490_v42 = vadd.f32 %v479_v9, %v478_v34  ;;  %v508_v50 = vmul.f32 %v480_v37, %v480_v37 }
 0x172   : > { %v1393_v44 = vpop.f32.mrf.mxu0  ;;  %v1395_v45 = vpop.f32.mrf.mxu1  ;;  %v489_v16 = vmul.f32 %v1390_v39, %v474_v33 }
 0x173   : > { %v482_v46 = vmul.f32 %v470_v31, %v1393_v44  ;;  %v491_v47 = vadd.f32 %v490_v42, %v480_v37  ;;  %v509_v48 = vmul.f32 %v481_v41, %v481_v41  ;;  %v518_v51 = vadd.f32 %v507_v40, %v506_v43 }
 0x174   : > { %v1398_v49 = vpop.f32.mrf.mxu0  ;;  %v483_v53 = vmul.f32 %v474_v33, %v1395_v45  ;;  %v517_v24 = vmul.f32 %v489_v16, %v489_v16 }
 0x175   : > { %v510_v52 = vmul.f32 %v482_v46, %v482_v46  ;;  %v484_v54 = vmul.f32 %v466_v30, %v1398_v49  ;;  %492 = vadd.xlane.f32.xlu0 %v491_v47  ;;  %v494_v55 = vadd.f32 %v482_v46, %v481_v41  ;;  %v519_v58 = vadd.f32 %v518_v51, %v508_v50 }
 0x176   : > { %v1402_v56 = vpop.f32.mrf.mxu0  ;;  %v511_v1 = vmul.f32 %v483_v53, %v483_v53 }
 0x177   : > { %v485_v57 = vmul.f32 %v470_v31, %v1402_v56  ;;  %v495_v59 = vadd.f32 %v494_v55, %v483_v53  ;;  %v522_v60 = vadd.f32 %v510_v52, %v509_v48  ;;  %v512_v63 = vmul.f32 %v484_v54, %v484_v54 }
 0x178   : > { %v1406_v62 = vpop.f32.mrf.mxu0 }
 0x179   : > { %v513_v0 = vmul.f32 %v485_v57, %v485_v57  ;;  %520 = vadd.xlane.f32.xlu0 %v519_v58  ;;  %496 = vadd.xlane.f32.xlu1 %v495_v59  ;;  %v487_v5 = vmul.f32 %v466_v30, %v1406_v62  ;;  %v498_v11 = vadd.f32 %v485_v57, %v484_v54 }
 0x17a   : > { %v409_v6 = vpop.f32.mrf.mxu0  ;;  %v523_v13 = vadd.f32 %v522_v60, %v511_v1 }
 0x17b   : > { %v488_v12 = vmul.f32 %v470_v31, %v409_v6  ;;  %v526_v14 = vadd.f32 %v513_v0, %v512_v63  ;;  %v499_v15 = vadd.f32 %v498_v11, %v486_v61  ;;  %v515_v20 = vmul.f32 %v487_v5, %v487_v5 }
 0x17d   : > { %v516_v17 = vmul.f32 %v488_v12, %v488_v12  ;;  %524 = vadd.xlane.f32.xlu1 %v523_v13  ;;  %v502_v19 = vadd.f32 %v488_v12, %v487_v5  ;;  %500 = vadd.xlane.f32.xlu0 %v499_v15  ;;  %v527_v21 = vadd.f32 %v526_v14, %v514_v18 }
 0x17f   : > { %v503_v22 = vadd.f32 %v502_v19, %v489_v16  ;;  %v530_v23 = vadd.f32 %v516_v17, %v515_v20 }
 0x181   : > { %528 = vadd.xlane.f32.xlu1 %v527_v21  ;;  %504 = vadd.xlane.f32.xlu0 %v503_v22  ;;  %v531_v25 = vadd.f32 %v530_v23, %v517_v24 }
 0x185   : > { %532 = vadd.xlane.f32.xlu0 %v531_v25 }
 0x1fe   : > { %v493_v26 = vpop.xlane.xlu0 %492 }
 0x202   : > { %v521_v27 = vpop.xlane.xlu0 %520  ;;  %v497_v2 = vpop.xlane.xlu1 %496 }
 0x203   : > { %v534_v28 = vadd.f32 %v497_v2, %v493_v26 }
 0x206   : > { %v525_v3 = vpop.xlane.xlu1 %524  ;;  %v501_v4 = vpop.xlane.xlu0 %500 }
 0x207   : > { %v535_v29 = vadd.f32 %v534_v28, %v501_v4  ;;  %v537_v33 = vadd.f32 %v525_v3, %v521_v27 }
 0x20a   : > { %v529_v30 = vpop.xlane.xlu1 %528  ;;  %v505_v31 = vpop.xlane.xlu0 %504 }
 0x20b   : > { %v536_v34 = vadd.f32 %v535_v29, %v505_v31  ;;  %v538_v9 = vadd.f32 %v537_v33, %v529_v30  ;;  %v729_v31 = vld [vmem:[%s1574_s3] sm:$0xff] }
 0x20d   : > { %v540_v37 = vmul.f32 0.0009765625, %v536_v34  ;;  %v731_v34 = vld [vmem:[%s1574_s3 + $0x10] sm:$0xff] }
 0x20e   : > { %v533_v40 = vpop.xlane.xlu0 %532 }
 0x20f   : > { %v539_v41 = vadd.f32 %v538_v9, %v533_v40  ;;  %549 = vperm.xlu1 %1127, %v540_v37   ;;  %v542_v42 = vmul.f32 %v540_v37, %v540_v37  ;;  %v730_v9 = vld [vmem:[%s1574_s3 + $0x8] sm:$0xff]  ;;  %v1463_v37 = vld [vmem:[%s1573_s2] sm:$0xff]   ;;  %v732_v40 = vld [vmem:[%s1574_s3 + $0x18] sm:$0xff] }
 0x210   : > { %1063 = vmatprep.mubr.bf16.mxu1 %v1463_v37 }
 0x211   : > { %v541_v43 = vmul.f32 0.0009765625, %v539_v41 }
 0x213   : > { %v543_v46 = vsub.f32 %v541_v43, %v542_v42 }
 0x215   : > { %v544_v47 = vmax.f32 %v543_v46, 0.0 }
 0x217   : > { %v545_v48 = vadd.f32 1e-05, %v544_v47 }
 0x219   : > { %1223 = vrsqrt.f32 %v545_v48 }
 0x226   : > { %v1224_v50 = vpop.eup %1223 }
 0x227   : > { %566 = vperm.xlu0 %1128, %v1224_v50  }
 0x28a   : > { %v550_v51 = vpop.permute.xlu1 %549 }
 0x28b   : > { %v559_v52 = vsub.f32 %v1402_v56, %v550_v51  ;;  %v562_v53 = vsub.f32 %v409_v6, %v550_v51  ;;  %v558_v54 = vsub.f32 %v1398_v49, %v550_v51  ;;  %v561_v55 = vsub.f32 %v1406_v62, %v550_v51 }
 0x28c   : > { %v560_v58 = vsub.f32 %v1379_v32, %v550_v51  ;;  %v563_v59 = vsub.f32 %v1390_v39, %v550_v51  ;;  %v554_v60 = vsub.f32 %v1384_v36, %v550_v51  ;;  %v557_v61 = vsub.f32 %v1395_v45, %v550_v51 }
 0x28d   : > { %v553_v39 = vsub.f32 %v1382_v35, %v550_v51  ;;  %v556_v36 = vsub.f32 %v1393_v44, %v550_v51  ;;  %v552_v20 = vsub.f32 %v1377_v7, %v550_v51  ;;  %v555_v21 = vsub.f32 %v1388_v38, %v550_v51 }
 0x2a2   : > { %v567_v57 = vpop.permute.xlu0 %566 }
 0x2a3   : > { %v576_v63 = vmul.f32 %v567_v57, %v559_v52  ;;  %v579_v0 = vmul.f32 %v567_v57, %v562_v53  ;;  %v575_v1 = vmul.f32 %v567_v57, %v558_v54  ;;  %v578_v5 = vmul.f32 %v567_v57, %v561_v55 }
 0x2a4   : > { %v577_v11 = vmul.f32 %v567_v57, %v560_v58  ;;  %v580_v56 = vmul.f32 %v567_v57, %v563_v59  ;;  %v571_v6 = vmul.f32 %v567_v57, %v554_v60  ;;  %v574_v12 = vmul.f32 %v567_v57, %v557_v61 }
 0x2a5   : > { %v588_v49 = vmax.f32 %v576_v63, 0.0  ;;  %v591_v13 = vmax.f32 %v579_v0, 0.0  ;;  %v587_v62 = vmax.f32 %v575_v1, 0.0  ;;  %v590_v14 = vmax.f32 %v578_v5, 0.0 }
 0x2a6   : > { %v589_v15 = vmax.f32 %v577_v11, 0.0  ;;  %v592_v32 = vmax.f32 %v580_v56, 0.0  ;;  %v583_v17 = vmax.f32 %v571_v6, 0.0  ;;  %v586_v18 = vmax.f32 %v574_v12, 0.0 }
 0x2a7   : > { %v1129_v16 = vpack.i.bf16 %v591_v13, %v588_v49  ;;  %v1169_v45 = vpack.i.bf16 %v590_v14, %v587_v62  ;;  %v570_v19 = vmul.f32 %v567_v57, %v553_v39  ;;  %v573_v22 = vmul.f32 %v567_v57, %v556_v36 }
 0x2a8   : > { %v569_v24 = vmul.f32 %v567_v57, %v552_v20  ;;  %v572_v25 = vmul.f32 %v567_v57, %v555_v21  ;;  %v1134_v35 = vpack.i.bf16 %v592_v32, %v589_v15  ;;  %v1179_v26 = vpack.i.bf16 %v586_v18, %v583_v17 }
 0x2a9   : > { %1130 = vrot.lane.b32.xlu1 %v1129_v16, %s1237_s28  ;;  %1170 = vrot.lane.b32.xlu0 %v1169_v45, %s1238_s29  ;;  %v582_v23 = vmax.f32 %v570_v19, 0.0  ;;  %v585_v44 = vmax.f32 %v573_v22, 0.0  ;;  %v1423_v27 = vpack.c.bf16 %v591_v13, %v588_v49  ;;  %v1425_v4 = vpack.c.bf16 %v592_v32, %v589_v15 }
 0x2aa   : > { %v581_v2 = vmax.f32 %v569_v24, 0.0  ;;  %v584_v3 = vmax.f32 %v572_v25, 0.0  ;;  %v1427_v7 = vpack.c.bf16 %v590_v14, %v587_v62  ;;  %v1433_v28 = vpack.c.bf16 %v586_v18, %v583_v17 }
 0x2ab   : > { %v1431_v38 = vpack.c.bf16 %v585_v44, %v582_v23  ;;  %v1144_v30 = vpack.i.bf16 %v585_v44, %v582_v23 }
 0x2ac   : > { %v1435_v29 = vpack.c.bf16 %v584_v3, %v581_v2  ;;  %v1154_v33 = vpack.i.bf16 %v584_v3, %v581_v2 }
 0x2ad   : > { %1135 = vrot.lane.b32.xlu1 %v1134_v35, %s1237_s28  ;;  %1180 = vrot.lane.b32.xlu0 %v1179_v26, %s1238_s29 }
 0x2b1   : > { %1140 = vrot.lane.b32.xlu1 %v1169_v45, %s1237_s28  ;;  %1190 = vrot.lane.b32.xlu0 %v1129_v16, %s1241_s8 }
 0x2b5   : > { %1200 = vrot.lane.b32.xlu0 %v1169_v45, %s1241_s8  ;;  %1145 = vrot.lane.b32.xlu1 %v1144_v30, %s1237_s28 }
 0x2b9   : > { %1210 = vrot.lane.b32.xlu0 %v1179_v26, %s1241_s8  ;;  %1150 = vrot.lane.b32.xlu1 %v1179_v26, %s1237_s28 }
 0x2bd   : > { %735 = vperm.xlu0 %1128, %v729_v31   ;;  %1155 = vrot.lane.b32.xlu1 %v1154_v33, %s1237_s28 }
 0x2c1   : > { %745 = vperm.xlu0 %1128, %v731_v34   ;;  %1160 = vrot.lane.b32.xlu1 %v1129_v16, %s1238_s29 }
 0x2c5   : > { %1165 = vrot.lane.b32.xlu1 %v1134_v35, %s1238_s29 }
 0x2c9   : > { %1175 = vrot.lane.b32.xlu1 %v1144_v30, %s1238_s29 }
 0x2cd   : > { %1185 = vrot.lane.b32.xlu1 %v1154_v33, %s1238_s29 }
 0x2d1   : > { %1195 = vrot.lane.b32.xlu1 %v1134_v35, %s1241_s8 }
 0x2d5   : > { %1205 = vrot.lane.b32.xlu1 %v1144_v30, %s1241_s8 }
 0x2d9   : > { %1215 = vrot.lane.b32.xlu1 %v1154_v33, %s1241_s8 }
 0x2dd   : > { %740 = vperm.xlu1 %1127, %v730_v9  }
 0x2e1   : > { %750 = vperm.xlu1 %1127, %v732_v40  }
 0x31b   : > { %v1131_v41 = vpop.permute.xlu1 %1130  ;;  %v1171_v1 = vpop.permute.xlu0 %1170 }
 0x31c   : > { %v1133_v43 = vunpack.i.h.bf16 %v1131_v41  ;;  %v1132_v46 = vunpack.i.l.bf16 %v1131_v41  ;;  %v1173_v23 = vunpack.i.h.bf16 %v1171_v1  ;;  %v1172_v24 = vunpack.i.l.bf16 %v1171_v1 }
 0x31f   : > { %v1136_v42 = vpop.permute.xlu1 %1135  ;;  %v1181_v39 = vpop.permute.xlu0 %1180 }
 0x320   : > { %v1138_v47 = vunpack.i.h.bf16 %v1136_v42  ;;  %v1137_v48 = vunpack.i.l.bf16 %v1136_v42  ;;  %v1183_v9 = vunpack.i.h.bf16 %v1181_v39 }
 0x322   : > { %v691_v50 = vsel %vm269_vm6, %v1132_v46, %v1137_v48  ;;  %v692_v51 = vsel %vm269_vm6, %v1133_v43, %v1138_v47 }
 0x323   : > { %v1141_v52 = vpop.permute.xlu1 %1140  ;;  %v723_v53 = vpack.c.bf16 %v692_v51, %v691_v50  ;;  %v1191_v25 = vpop.permute.xlu0 %1190 }
 0x324   : > { %v1143_v54 = vunpack.i.h.bf16 %v1141_v52  ;;  %v1142_v55 = vunpack.i.l.bf16 %v1141_v52 }
 0x325   : > { %765 = vmatprep.subr.bf16.mxu0 %v723_v53 }
 0x326   : > { %v696_v57 = vsel %vm269_vm6, %v1143_v54, %v1133_v43  ;;  %v695_v58 = vsel %vm269_vm6, %v1142_v55, %v1132_v46  ;;  %v699_v59 = vsel %vm269_vm6, %v1137_v48, %v1142_v55  ;;  %v700_v60 = vsel %vm269_vm6, %v1138_v47, %v1143_v54 }
 0x327   : > { %v722_v61 = vpack.c.bf16 %v696_v57, %v695_v58  ;;  %v1146_v63 = vpop.permute.xlu1 %1145  ;;  %v724_v0 = vpack.c.bf16 %v700_v60, %v699_v59  ;;  %v1182_v43 = vunpack.i.l.bf16 %v1181_v39  ;;  %v1201_v50 = vpop.permute.xlu0 %1200  ;;  %v1193_v60 = vunpack.i.h.bf16 %v1191_v25 }
 0x328   : > { %v1148_v11 = vunpack.i.h.bf16 %v1146_v63  ;;  %v1147_v56 = vunpack.i.l.bf16 %v1146_v63  ;;  %v1203_v55 = vunpack.i.h.bf16 %v1201_v50  ;;  %v1202_v57 = vunpack.i.l.bf16 %v1201_v50 }
 0x329   : > { %766 = vmatpush1.bf16.msra.mxu0 %v722_v61  ;;  %1047 = vmatprep.subr.bf16.mxu1 %v724_v0  ;;  %v1192_v61 = vunpack.i.l.bf16 %v1191_v25 }
 0x32a   : > { %1048 = vmatpush3.bf16.msra.mxu1 %v724_v0 }
 0x32b   : > { %v1151_v5 = vpop.permute.xlu1 %1150 }
 0x32c   : > { %v1153_v6 = vunpack.i.h.bf16 %v1151_v5  ;;  %v1152_v12 = vunpack.i.l.bf16 %v1151_v5 }
 0x32e   : > { %v689_v49 = vsel %vm269_vm6, %v1147_v56, %v1152_v12  ;;  %v690_v13 = vsel %vm269_vm6, %v1148_v11, %v1153_v6 }
 0x32f   : > { %v1156_v62 = vpop.permute.xlu1 %1155  ;;  %v720_v14 = vpack.c.bf16 %v690_v13, %v689_v49  ;;  %v624_v49 = vsel %vm239_vm9, %v1203_v55, %v1193_v60 }
 0x330   : > { %v1158_v15 = vunpack.i.h.bf16 %v1156_v62  ;;  %v1157_v32 = vunpack.i.l.bf16 %v1156_v62 }
 0x331   : > { %767 = vmatprep.subr.bf16.mxu0 %v720_v14  ;;  %v1211_v14 = vpop.permute.xlu0 %1210 }
 0x332   : > { %v694_v36 = vsel %vm269_vm6, %v1158_v15, %v1148_v11  ;;  %v693_v16 = vsel %vm269_vm6, %v1157_v32, %v1147_v56  ;;  %v697_v45 = vsel %vm269_vm6, %v1152_v12, %v1157_v32  ;;  %v698_v17 = vsel %vm269_vm6, %v1153_v6, %v1158_v15 }
 0x333   : > { %v719_v18 = vpack.c.bf16 %v694_v36, %v693_v16  ;;  %v1161_v19 = vpop.permute.xlu1 %1160  ;;  %v721_v20 = vpack.c.bf16 %v698_v17, %v697_v45  ;;  %v623_v12 = vsel %vm239_vm9, %v1202_v57, %v1192_v61 }
 0x334   : > { %v1163_v21 = vunpack.i.h.bf16 %v1161_v19  ;;  %v1162_v22 = vunpack.i.l.bf16 %v1161_v19  ;;  %v710_v16 = vpack.c.bf16 %v624_v49, %v623_v12  ;;  %v1213_v19 = vunpack.i.h.bf16 %v1211_v14 }
 0x335   : > { %768 = vmatpush1.bf16.msra.mxu0 %v719_v18  ;;  %1049 = vmatprep.subr.bf16.mxu1 %v721_v20 }
 0x336   : > { %1050 = vmatpush3.bf16.msra.mxu1 %v721_v20  ;;  %v660_v2 = vsel %vm259_vm7, %v1173_v23, %v1163_v21  ;;  %v659_v3 = vsel %vm259_vm7, %v1172_v24, %v1162_v22  ;;  %v1212_v20 = vunpack.i.l.bf16 %v1211_v14 }
 0x337   : > { %v1166_v35 = vpop.permute.xlu1 %1165  ;;  %v716_v46 = vpack.c.bf16 %v660_v2, %v659_v3 }
 0x338   : > { %v1168_v26 = vunpack.i.h.bf16 %v1166_v35  ;;  %v1167_v44 = vunpack.i.l.bf16 %v1166_v35 }
 0x33a   : > { %v655_v30 = vsel %vm259_vm7, %v1162_v22, %v1167_v44  ;;  %v656_v31 = vsel %vm259_vm7, %v1163_v21, %v1168_v26  ;;  %v663_v33 = vsel %vm259_vm7, %v1167_v44, %v1172_v24  ;;  %v664_v34 = vsel %vm259_vm7, %v1168_v26, %v1173_v23 }
 0x33b   : > { %v1176_v40 = vpop.permute.xlu1 %1175  ;;  %v717_v41 = vpack.c.bf16 %v656_v31, %v655_v30  ;;  %v718_v42 = vpack.c.bf16 %v664_v34, %v663_v33 }
 0x33c   : > { %v1178_v47 = vunpack.i.h.bf16 %v1176_v40  ;;  %v1177_v48 = vunpack.i.l.bf16 %v1176_v40 }
 0x33d   : > { %769 = vmatprep.subr.bf16.mxu0 %v717_v41  ;;  %1051 = vmatprep.subr.bf16.mxu1 %v718_v42 }
 0x33e   : > { %770 = vmatpush1.bf16.msra.mxu0 %v716_v46  ;;  %1052 = vmatpush3.bf16.msra.mxu1 %v718_v42  ;;  %v653_v51 = vsel %vm259_vm7, %v1177_v48, %v1182_v43  ;;  %v654_v52 = vsel %vm259_vm7, %v1178_v47, %v1183_v9 }
 0x33f   : > { %v1186_v53 = vpop.permute.xlu1 %1185  ;;  %v714_v54 = vpack.c.bf16 %v654_v52, %v653_v51 }
 0x340   : > { %v1188_v58 = vunpack.i.h.bf16 %v1186_v53  ;;  %v1187_v59 = vunpack.i.l.bf16 %v1186_v53 }
 0x341   : > { %771 = vmatprep.subr.bf16.mxu0 %v714_v54 }
 0x342   : > { %v657_v63 = vsel %vm259_vm7, %v1187_v59, %v1177_v48  ;;  %v658_v0 = vsel %vm259_vm7, %v1188_v58, %v1178_v47  ;;  %v661_v1 = vsel %vm259_vm7, %v1182_v43, %v1187_v59  ;;  %v662_v5 = vsel %vm259_vm7, %v1183_v9, %v1188_v58 }
 0x343   : > { %v713_v11 = vpack.c.bf16 %v658_v0, %v657_v63  ;;  %v1196_v56 = vpop.permute.xlu1 %1195  ;;  %v715_v6 = vpack.c.bf16 %v662_v5, %v661_v1 }
 0x344   : > { %v1198_v13 = vunpack.i.h.bf16 %v1196_v56  ;;  %v1197_v62 = vunpack.i.l.bf16 %v1196_v56 }
 0x345   : > { %772 = vmatpush1.bf16.msra.mxu0 %v713_v11  ;;  %1053 = vmatprep.subr.bf16.mxu1 %v715_v6 }
 0x346   : > { %1054 = vmatpush3.bf16.msra.mxu1 %v715_v6  ;;  %v619_v15 = vsel %vm239_vm9, %v1192_v61, %v1197_v62  ;;  %v620_v32 = vsel %vm239_vm9, %v1193_v60, %v1198_v13  ;;  %v627_v39 = vsel %vm239_vm9, %v1197_v62, %v1202_v57  ;;  %v628_v36 = vsel %vm239_vm9, %v1198_v13, %v1203_v55 }
 0x347   : > { %v1206_v45 = vpop.permute.xlu1 %1205  ;;  %v711_v17 = vpack.c.bf16 %v620_v32, %v619_v15  ;;  %v712_v18 = vpack.c.bf16 %v628_v36, %v627_v39 }
 0x348   : > { %v1208_v21 = vunpack.i.h.bf16 %v1206_v45  ;;  %v1207_v22 = vunpack.i.l.bf16 %v1206_v45 }
 0x349   : > { %773 = vmatprep.subr.bf16.mxu0 %v711_v17  ;;  %1055 = vmatprep.subr.bf16.mxu1 %v712_v18 }
 0x34a   : > { %774 = vmatpush1.bf16.msra.mxu0 %v710_v16  ;;  %1056 = vmatpush3.bf16.msra.mxu1 %v712_v18  ;;  %v617_v23 = vsel %vm239_vm9, %v1207_v22, %v1212_v20  ;;  %v618_v24 = vsel %vm239_vm9, %v1208_v21, %v1213_v19 }
 0x34b   : > { %v1216_v25 = vpop.permute.xlu1 %1215  ;;  %v708_v35 = vpack.c.bf16 %v618_v24, %v617_v23 }
 0x34c   : > { %v1218_v26 = vunpack.i.h.bf16 %v1216_v25  ;;  %v1217_v44 = vunpack.i.l.bf16 %v1216_v25 }
 0x34d   : > { %775 = vmatprep.subr.bf16.mxu0 %v708_v35 }
 0x34e   : > { %v621_v2 = vsel %vm239_vm9, %v1217_v44, %v1207_v22  ;;  %v622_v3 = vsel %vm239_vm9, %v1218_v26, %v1208_v21  ;;  %v625_v30 = vsel %vm239_vm9, %v1212_v20, %v1217_v44  ;;  %v626_v31 = vsel %vm239_vm9, %v1213_v19, %v1218_v26 }
 0x34f   : > { %v707_v33 = vpack.c.bf16 %v622_v3, %v621_v2  ;;  %v709_v34 = vpack.c.bf16 %v626_v31, %v625_v30 }
 0x351   : > { %776 = vmatpush1.bf16.msra.mxu0 %v707_v33  ;;  %1057 = vmatprep.subr.bf16.mxu1 %v709_v34 }
 0x352   : > { %777 = vmatprep.subr.bf16.mxu0 %v1423_v27  ;;  %1058 = vmatpush3.bf16.msra.mxu1 %v709_v34  ;;  %v736_v27 = vpop.permute.xlu0 %735 }
 0x353   : > { %1059 = vmatprep.subr.bf16.mxu1 %v1425_v4 }
 0x355   : > { %778 = vmatpush1.bf16.msra.mxu0 %v1427_v7 }
 0x356   : > { %779 = vmatprep.subr.bf16.mxu0 %v1431_v38  ;;  %1060 = vmatpush3.bf16.msra.mxu1 %v1425_v4  ;;  %v746_v4 = vpop.permute.xlu0 %745 }
 0x357   : > { %1061 = vmatprep.subr.bf16.mxu1 %v1433_v28 }
 0x358   : > { %v741_v7 = vpop.permute.xlu1 %740 }
 0x359   : > { %780 = vmatpush1.bf16.msra.mxu0 %v1435_v29 }
 0x35a   : > { %1062 = vmatpush3.bf16.msra.mxu1 %v1433_v28 }
 0x35c   : > { %798 = vmatmul.mubr.bf16.vlgmr.msra.gmra.mxu0 %v1463_v37  ;;  %v751_v48 = vpop.permute.xlu1 %750 }
 0x35d   : > { %1064 = vmatmul.mubr.bf16.vlgmr.msra.gmra.mxu1 %v1222_v10  ;;  %807 = vmatprep.mubr.bf16.mxu0 %v1240_v8 }
 0x364   : > { %808 = vmatmul.mubr.bf16.gmra.mxu0 %v1222_v10 }
 0x41c   : > { %v799_v38 = vpop.f32.mrf.mxu0 }
 0x41d   : > { %v800_v9 = vadd.f32 %v799_v38, %v736_v27  ;;  %v1065_v40 = vpop.f32.mrf.mxu1 }
 0x41e   : > { %v861_v29 = vadd.f32 %v1065_v40, %v746_v4  ;;  %v801_v41 = vpop.f32.mrf.mxu0 }
 0x41f   : > { %v802_v42 = vadd.f32 %v801_v41, %v736_v27  ;;  %v852_v43 = vpop.f32.mrf.mxu1  ;;  %v867_v37 = vmax.f32 %v800_v9, 0.0 }
 0x420   : > { %v875_v46 = vmax.f32 %v861_v29, 0.0  ;;  %v853_v47 = vadd.f32 %v852_v43, %v736_v27  ;;  %v803_v28 = vpop.f32.mrf.mxu0 }
 0x421   : > { %v868_v8 = vmax.f32 %v802_v42, 0.0  ;;  %v804_v50 = vadd.f32 %v803_v28, %v741_v7  ;;  %v1066_v51 = vpop.f32.mrf.mxu1 }
 0x422   : > { %v1013_v52 = vpack.c.bf16 %v875_v46, %v875_v46  ;;  %v869_v53 = vmax.f32 %v853_v47, 0.0  ;;  %v864_v54 = vadd.f32 %v1066_v51, %v751_v48  ;;  %v805_v55 = vpop.f32.mrf.mxu0 }
 0x423   : > { %v1008_v57 = vpack.c.bf16 %v868_v8, %v867_v37  ;;  %v806_v58 = vadd.f32 %v805_v55, %v741_v7  ;;  %v855_v59 = vpop.f32.mrf.mxu1  ;;  %v870_v1 = vmax.f32 %v804_v50, 0.0 }
 0x424   : > { %924 = vst [vmem:[%s1558_s30 + $0x20] sm:$0xf] %v1013_v52  ;;  %v1009_v60 = vpack.c.bf16 %v869_v53, %v869_v53  ;;  %v878_v61 = vmax.f32 %v864_v54, 0.0  ;;  %v856_v63 = vadd.f32 %v855_v59, %v741_v7  ;;  %v809_v0 = vpop.f32.mrf.mxu0 }
 0x425   : > { %919 = vst [vmem:[%s1558_s30] sm:$0xff] %v1008_v57  ;;  %v871_v5 = vmax.f32 %v806_v58, 0.0  ;;  %v810_v11 = vadd.f32 %v809_v0, %v746_v4 }
 0x426   : > { %920 = vst [vmem:[%s1558_s30 + $0x8] sm:$0xf] %v1009_v60  ;;  %v1015_v56 = vpack.c.bf16 %v878_v61, %v878_v61  ;;  %v872_v6 = vmax.f32 %v856_v63, 0.0  ;;  %v811_v12 = vpop.f32.mrf.mxu0 }
 0x427   : > { %v1010_v49 = vpack.c.bf16 %v871_v5, %v870_v1  ;;  %v812_v13 = vadd.f32 %v811_v12, %v746_v4  ;;  %v873_v15 = vmax.f32 %v810_v11, 0.0 }
 0x428   : > { %926 = vst [vmem:[%s1558_s30 + $0x2c] sm:$0xf] %v1015_v56  ;;  %v1011_v62 = vpack.c.bf16 %v872_v6, %v872_v6  ;;  %v813_v14 = vpop.f32.mrf.mxu0 }
 0x429   : > { %921 = vst [vmem:[%s1558_s30 + $0xc] sm:$0xff] %v1010_v49  ;;  %v874_v32 = vmax.f32 %v812_v13, 0.0  ;;  %v814_v39 = vadd.f32 %v813_v14, %v751_v48 }
 0x42a   : > { %922 = vst [vmem:[%s1558_s30 + $0x14] sm:$0xf] %v1011_v62  ;;  %v815_v36 = vpop.f32.mrf.mxu0 }
 0x42b   : > { %v1012_v16 = vpack.c.bf16 %v874_v32, %v873_v15  ;;  %v816_v45 = vadd.f32 %v815_v36, %v751_v48  ;;  %v876_v17 = vmax.f32 %v814_v39, 0.0 }
 0x42d   : > { %923 = vst [vmem:[%s1558_s30 + $0x18] sm:$0xff] %v1012_v16  ;;  %v877_v18 = vmax.f32 %v816_v45, 0.0 }
 0x42f   : > { %v1014_v19 = vpack.c.bf16 %v877_v18, %v876_v17 }
 0x431   : > { %925 = vst [vmem:[%s1558_s30 + $0x24] sm:$0xff] %v1014_v19 }
 0x432 PF: > { %s15_s18 = sadd.s32 1, %s1231_s18  }
 0x433   : > { %p12_p4 = scmp.ge.s32.totalorder %s15_s18, 4  }
 0x435   :  { %14 = sbr.rel (!%p12_p4) target bundleno = 1 (0x1), region = 70 }

</bundles_post_ra>
